<compile_context>
chip_gen: v7x
topology: tpu7x:2x2x1
jax: 0.10.0
libtpu: 0.0.40
codegen_flags: <defaults>
</compile_context>

<pallas_src>
import functools

import numpy as np
import jax
import jax.numpy as jnp
from jax.experimental import pallas as pl
from jax.experimental.pallas import tpu as pltpu


# ----------------------------- Pallas kernel -----------------------------

def _local_att_kernel(x_ref, pool_ref, bhp_ref, bwp_ref,
                      w1_ref, b1_ref, whw_ref, o_ref, *, batch, ch, h, w):
    """Single grid step over the whole batch.

    x_ref   : (B*C, H*W)   bf16 input, lane-dense
    pool_ref: (H*W, H+W)   bf16, [mean-over-W | mean-over-H] pooling matrix
    bhp_ref : (H+W, H*W)   bf16, 0/1 expansion of an H-indexed value over W
                            (rows >= H are zero)
    bwp_ref : (H+W, H*W)   bf16, 0/1 expansion of a W-indexed value over H
                            (rows < H are zero)
    w1_ref  : (Cr, C)      bf16 conv_1x1 weight with BN scale folded in
    b1_ref  : (Cr, 1)      f32 folded BN bias
    whw_ref : (C, 2*Cr)    bf16 concatenated [F_h | F_w] weights
    o_ref   : (B*C, H*W)   f32 output, lane-dense
    """
    hpw = h + w
    cr = w1_ref.shape[0]

    xm = x_ref[...]                                                    # (B*C, HW) bf16

    # mean over W (per h) and mean over H (per w), already concatenated,
    # for ALL batch elements in one MXU call (row-parallel in B*C).
    cat = jnp.dot(xm, pool_ref[...],
                  preferred_element_type=jnp.float32)                  # (B*C, H+W)

    lane = jax.lax.broadcasted_iota(jnp.int32, (cr, hpw), 1)

    s_parts = []
    for b in range(batch):                                             # static, tiny B
        cat_b = cat[b * ch:(b + 1) * ch, :].astype(jnp.bfloat16)       # (C, H+W)

        # conv_1x1 (BN scale folded) + BN bias + ReLU
        z = jnp.dot(w1_ref[...], cat_b,
                    preferred_element_type=jnp.float32)                # (Cr, H+W)
        z = jnp.maximum(z + b1_ref[...], 0.0)

        # Split into H / W halves without a mid-vreg lane slice: build a
        # lane-masked block-diagonal stack and use one K=2*Cr matmul with the
        # concatenated [F_h | F_w] weight.
        z2 = jnp.concatenate([jnp.where(lane < h, z, 0.0),
                              jnp.where(lane < h, 0.0, z)],
                             axis=0).astype(jnp.bfloat16)              # (2Cr, H+W)
        s = jax.nn.sigmoid(jnp.dot(whw_ref[...], z2,
                                   preferred_element_type=jnp.float32))  # (C, H+W)
        s_parts.append(s)

    s_all = jnp.concatenate(s_parts, axis=0).astype(jnp.bfloat16)      # (B*C, H+W)

    # Broadcast s_h over W and s_w over H via constant 0/1 matrices (MXU path,
    # no cross-lane relayouts).  NOTE: at very large H,W on v5e this trick
    # could flip the kernel compute-bound; fine at these sizes.
    sh_exp = jnp.dot(s_all, bhp_ref[...],
                     preferred_element_type=jnp.float32)               # (B*C, HW)
    sw_exp = jnp.dot(s_all, bwp_ref[...],
                     preferred_element_type=jnp.float32)               # (B*C, HW)

    o_ref[...] = xm.astype(jnp.float32) * sh_exp * sw_exp


# ----------------------------- spatial constants (cached) -----------------------------

@functools.lru_cache(maxsize=None)
def _spatial_constants(h, w):
    """Pooling + broadcast matrices, built once per (h, w) on host."""
    hw = h * w
    p = np.arange(hw)
    row = p // w
    col = p % w

    pool = np.zeros((hw, h + w), np.float32)          # [mean over W | mean over H]
    pool[p, row] = 1.0 / w                            # exact in bf16 for pow-2 w
    pool[p, h + col] = 1.0 / h

    bhp = np.zeros((h + w, hw), np.float32)           # expand H-indexed value over W
    bhp[row, p] = 1.0
    bwp = np.zeros((h + w, hw), np.float32)           # expand W-indexed value over H
    bwp[h + col, p] = 1.0

    dt = jnp.bfloat16
    return jnp.asarray(pool, dt), jnp.asarray(bhp, dt), jnp.asarray(bwp, dt)


# ----------------------------- wrapper -----------------------------

def local_att_forward(params, x):
    """x: (B, C, H, W) NCHW, f32 -> (B, C, H, W) f32."""
    b, c, h, w = x.shape
    hw = h * w
    cr = params['w1_bf16'].shape[0]

    pool, bhp, bwp = _spatial_constants(h, w)
    x2d = x.astype(jnp.bfloat16).reshape(b * c, hw)    # lane-dense, half DMA bytes

    kernel = functools.partial(_local_att_kernel, batch=b, ch=c, h=h, w=w)
    out2d = pl.pallas_call(
        kernel,
        out_shape=jax.ShapeDtypeStruct((b * c, hw), jnp.float32),
        grid=(1,),
        in_specs=[
            pl.BlockSpec((b * c, hw), lambda i: (0, 0)),
            pl.BlockSpec((hw, h + w), lambda i: (0, 0)),
            pl.BlockSpec((h + w, hw), lambda i: (0, 0)),
            pl.BlockSpec((h + w, hw), lambda i: (0, 0)),
            pl.BlockSpec((cr, c), lambda i: (0, 0)),
            pl.BlockSpec((cr, 1), lambda i: (0, 0)),
            pl.BlockSpec((c, 2 * cr), lambda i: (0, 0)),
        ],
        out_specs=pl.BlockSpec((b * c, hw), lambda i: (0, 0)),
        compiler_params=pltpu.CompilerParams(dimension_semantics=("arbitrary",)),
    )(x2d, pool, bhp, bwp,
      params['w1_bf16'], params['b1_folded'], params['whw_bf16'])

    return out2d.reshape(b, c, h, w)


# ----------------------------- parameters -----------------------------

def init_params(channel, reduction, key, eps=1e-5):
    cr = channel // reduction
    k1, k2, k3, k4, k5, k6, k7 = jax.random.split(key, 7)

    w1 = 0.3 * jax.random.normal(k1, (cr, channel), jnp.float32)   # conv_1x1 (out,in,1,1)
    wh = 0.3 * jax.random.normal(k2, (channel, cr), jnp.float32)   # F_h
    ww = 0.3 * jax.random.normal(k3, (channel, cr), jnp.float32)   # F_w

    # BatchNorm (eval mode / running statistics) parameters
    gamma = 1.0 + 0.1 * jax.random.normal(k4, (cr,), jnp.float32)
    beta = 0.1 * jax.random.normal(k5, (cr,), jnp.float32)
    mean = 0.1 * jax.random.normal(k6, (cr,), jnp.float32)
    var = jax.random.uniform(k7, (cr,), jnp.float32, 0.5, 1.5)

    scale = gamma / jnp.sqrt(var + eps)
    bias = beta - mean * scale

    return {
        # raw f32 params (used by the pure-JAX reference)
        'w1': w1, 'wh': wh, 'ww': ww,
        'gamma': gamma, 'beta': beta, 'mean': mean, 'var': var, 'eps': eps,
        # kernel params: BN folded, bf16 where they feed the MXU
        'w1_bf16': (w1 * scale[:, None]).astype(jnp.bfloat16),        # (Cr, C)
        'b1_folded': bias[:, None],                                   # (Cr, 1) f32
        'whw_bf16': jnp.concatenate([wh, ww], axis=1).astype(jnp.bfloat16),  # (C, 2Cr)
    }


# ----------------------------- pure-JAX reference (f32) -----------------------------

def local_att_ref(params, x):
    b, c, h, w = x.shape
    x_h = jnp.mean(x, axis=3)                                      # (B, C, H)  mean over W
    x_w = jnp.mean(x, axis=2)                                      # (B, C, W)  mean over H
    cat = jnp.concatenate([x_h, x_w], axis=2)                      # (B, C, H+W)
    z = jnp.einsum('jc,bcp->bjp', params['w1'], cat)               # (B, Cr, H+W)
    s = params['gamma'] / jnp.sqrt(params['var'] + params['eps'])
    z = z * s[None, :, None] + (params['beta'] - params['mean'] * s)[None, :, None]
    z = jnp.maximum(z, 0.0)
    y_h, y_w = z[:, :, :h], z[:, :, h:]
    s_h = jax.nn.sigmoid(jnp.einsum('cj,bjh->bch', params['wh'], y_h))  # (B, C, H)
    s_w = jax.nn.sigmoid(jnp.einsum('cj,bjw->bcw', params['ww'], y_w))  # (B, C, W)
    return x * s_h[:, :, :, None] * s_w[:, :, None, :]


# ----------------------------- main -----------------------------

if __name__ == "__main__":
    key = jax.random.PRNGKey(0)
    k_in, k_par = jax.random.split(key)

    B, channel, H, W = 2, 64, 16, 16          # channel // reduction = 4
    reduction = 16

    x = jax.random.normal(k_in, (B, channel, H, W), jnp.float32)
    params = init_params(channel, reduction, k_par)

    out = jax.block_until_ready(local_att_forward(params, x))
    ref = jax.block_until_ready(local_att_ref(params, x))

    assert out.shape == (B, channel, H, W), out.shape
    assert bool(jnp.all(jnp.isfinite(out)))
    # bf16 MXU inputs -> ~1e-2 level agreement with the f32 reference
    max_err = float(jnp.max(jnp.abs(out - ref)))
    assert bool(jnp.allclose(out, ref, rtol=3e-2, atol=3e-2)), max_err
    print("KERNEL_OK")
</pallas_src>

<mosaic_0001>
module attributes {stable_mosaic.version = 11 : i64} {
  func.func @_local_att_kernel(%arg0: i32, %arg1: memref<128x256xbf16, #tpu.memory_space<vmem>>, %arg2: memref<256x32xbf16, #tpu.memory_space<vmem>>, %arg3: memref<32x256xbf16, #tpu.memory_space<vmem>>, %arg4: memref<32x256xbf16, #tpu.memory_space<vmem>>, %arg5: memref<4x64xbf16, #tpu.memory_space<vmem>>, %arg6: memref<4x1xf32, #tpu.memory_space<vmem>>, %arg7: memref<64x8xbf16, #tpu.memory_space<vmem>>, %arg8: memref<128x256xf32, #tpu.memory_space<vmem>>) attributes {dimension_semantics = [#tpu.dimension_semantics<arbitrary>], iteration_bounds = array<i64: 1>, scalar_prefetch = 0 : i64, scratch_operands = 0 : i64, tpu.core_type = #tpu.core_type<tc>, window_params = [{pipeline_mode = #tpu.pipeline_mode<synchronous>, transform_indices = @transform_0, window_bounds = array<i64: 128, 256>}, {pipeline_mode = #tpu.pipeline_mode<synchronous>, transform_indices = @transform_1, window_bounds = array<i64: 256, 32>}, {pipeline_mode = #tpu.pipeline_mode<synchronous>, transform_indices = @transform_2, window_bounds = array<i64: 32, 256>}, {pipeline_mode = #tpu.pipeline_mode<synchronous>, transform_indices = @transform_3, window_bounds = array<i64: 32, 256>}, {pipeline_mode = #tpu.pipeline_mode<synchronous>, transform_indices = @transform_4, window_bounds = array<i64: 4, 64>}, {pipeline_mode = #tpu.pipeline_mode<synchronous>, transform_indices = @transform_5, window_bounds = array<i64: 4, 1>}, {pipeline_mode = #tpu.pipeline_mode<synchronous>, transform_indices = @transform_6, window_bounds = array<i64: 64, 8>}, {pipeline_mode = #tpu.pipeline_mode<synchronous>, transform_indices = @transform_7, window_bounds = array<i64: 128, 256>}]} {
    %c0 = arith.constant 0 : index
    %c0_0 = arith.constant 0 : index
    %0 = vector.load %arg1[%c0, %c0_0] : memref<128x256xbf16, #tpu.memory_space<vmem>>, vector<128x256xbf16>
    %c0_1 = arith.constant 0 : index
    %c0_2 = arith.constant 0 : index
    %1 = vector.load %arg2[%c0_1, %c0_2] : memref<256x32xbf16, #tpu.memory_space<vmem>>, vector<256x32xbf16>
    %cst = arith.constant dense<0.000000e+00> : vector<128x32xf32>
    %2 = tpu.matmul %0, %1, %cst {dimension_numbers = #tpu.dot_dimension_numbers<[1], [0], [0], [1], [0, 0, 1, 1], [], []>} : vector<128x256xbf16>, vector<256x32xbf16>, vector<128x32xf32> -> vector<128x32xf32>
    %3 = tpu.iota {dimensions = array<i32: 1>} : vector<4x32xi32>
    %4 = vector.extract_strided_slice %2 {offsets = [0, 0], sizes = [64, 32], strides = [1, 1]} : vector<128x32xf32> to vector<64x32xf32>
    %5 = arith.truncf %4 : vector<64x32xf32> to vector<64x32xbf16>
    %c0_3 = arith.constant 0 : index
    %c0_4 = arith.constant 0 : index
    %6 = vector.load %arg5[%c0_3, %c0_4] : memref<4x64xbf16, #tpu.memory_space<vmem>>, vector<4x64xbf16>
    %cst_5 = arith.constant dense<0.000000e+00> : vector<4x32xf32>
    %7 = tpu.matmul %6, %5, %cst_5 {dimension_numbers = #tpu.dot_dimension_numbers<[1], [0], [0], [1], [0, 0, 1, 1], [], []>} : vector<4x64xbf16>, vector<64x32xbf16>, vector<4x32xf32> -> vector<4x32xf32>
    %c0_6 = arith.constant 0 : index
    %c0_7 = arith.constant 0 : index
    %8 = vector.load %arg6[%c0_6, %c0_7] : memref<4x1xf32, #tpu.memory_space<vmem>>, vector<4x1xf32>
    %9 = vector.broadcast %8 : vector<4x1xf32> to vector<4x32xf32>
    %10 = arith.addf %7, %9 : vector<4x32xf32>
    %cst_8 = arith.constant 0.000000e+00 : f32
    %11 = vector.broadcast %cst_8 : f32 to vector<4x32xf32>
    %12 = arith.maximumf %10, %11 : vector<4x32xf32>
    %c16_i32 = arith.constant 16 : i32
    %13 = vector.broadcast %c16_i32 : i32 to vector<4x32xi32>
    %14 = arith.cmpi slt, %3, %13 : vector<4x32xi32>
    %cst_9 = arith.constant 0.000000e+00 : f32
    %15 = vector.broadcast %cst_9 : f32 to vector<4x32xf32>
    %16 = arith.select %14, %12, %15 : vector<4x32xi1>, vector<4x32xf32>
    %c16_i32_10 = arith.constant 16 : i32
    %17 = vector.broadcast %c16_i32_10 : i32 to vector<4x32xi32>
    %18 = arith.cmpi slt, %3, %17 : vector<4x32xi32>
    %cst_11 = arith.constant 0.000000e+00 : f32
    %19 = vector.broadcast %cst_11 : f32 to vector<4x32xf32>
    %20 = arith.select %18, %19, %12 : vector<4x32xi1>, vector<4x32xf32>
    %21 = tpu.concatenate %16, %20 in 0 : vector<4x32xf32>, vector<4x32xf32> -> vector<8x32xf32>
    %22 = arith.truncf %21 : vector<8x32xf32> to vector<8x32xbf16>
    %c0_12 = arith.constant 0 : index
    %c0_13 = arith.constant 0 : index
    %23 = vector.load %arg7[%c0_12, %c0_13] : memref<64x8xbf16, #tpu.memory_space<vmem>>, vector<64x8xbf16>
    %cst_14 = arith.constant dense<0.000000e+00> : vector<64x32xf32>
    %24 = tpu.matmul %23, %22, %cst_14 {dimension_numbers = #tpu.dot_dimension_numbers<[1], [0], [0], [1], [0, 0, 1, 1], [], []>} : vector<64x8xbf16>, vector<8x32xbf16>, vector<64x32xf32> -> vector<64x32xf32>
    %25 = arith.negf %24 : vector<64x32xf32>
    %26 = math.exp %25 : vector<64x32xf32>
    %cst_15 = arith.constant 1.000000e+00 : f32
    %27 = vector.broadcast %cst_15 : f32 to vector<64x32xf32>
    %28 = arith.addf %27, %26 : vector<64x32xf32>
    %29 = arith.divf %27, %28 : vector<64x32xf32>
    %30 = vector.extract_strided_slice %2 {offsets = [64, 0], sizes = [64, 32], strides = [1, 1]} : vector<128x32xf32> to vector<64x32xf32>
    %31 = arith.truncf %30 : vector<64x32xf32> to vector<64x32xbf16>
    %c0_16 = arith.constant 0 : index
    %c0_17 = arith.constant 0 : index
    %32 = vector.load %arg5[%c0_16, %c0_17] : memref<4x64xbf16, #tpu.memory_space<vmem>>, vector<4x64xbf16>
    %cst_18 = arith.constant dense<0.000000e+00> : vector<4x32xf32>
    %33 = tpu.matmul %32, %31, %cst_18 {dimension_numbers = #tpu.dot_dimension_numbers<[1], [0], [0], [1], [0, 0, 1, 1], [], []>} : vector<4x64xbf16>, vector<64x32xbf16>, vector<4x32xf32> -> vector<4x32xf32>
    %c0_19 = arith.constant 0 : index
    %c0_20 = arith.constant 0 : index
    %34 = vector.load %arg6[%c0_19, %c0_20] : memref<4x1xf32, #tpu.memory_space<vmem>>, vector<4x1xf32>
    %35 = vector.broadcast %34 : vector<4x1xf32> to vector<4x32xf32>
    %36 = arith.addf %33, %35 : vector<4x32xf32>
    %cst_21 = arith.constant 0.000000e+00 : f32
    %37 = vector.broadcast %cst_21 : f32 to vector<4x32xf32>
    %38 = arith.maximumf %36, %37 : vector<4x32xf32>
    %c16_i32_22 = arith.constant 16 : i32
    %39 = vector.broadcast %c16_i32_22 : i32 to vector<4x32xi32>
    %40 = arith.cmpi slt, %3, %39 : vector<4x32xi32>
    %cst_23 = arith.constant 0.000000e+00 : f32
    %41 = vector.broadcast %cst_23 : f32 to vector<4x32xf32>
    %42 = arith.select %40, %38, %41 : vector<4x32xi1>, vector<4x32xf32>
    %c16_i32_24 = arith.constant 16 : i32
    %43 = vector.broadcast %c16_i32_24 : i32 to vector<4x32xi32>
    %44 = arith.cmpi slt, %3, %43 : vector<4x32xi32>
    %cst_25 = arith.constant 0.000000e+00 : f32
    %45 = vector.broadcast %cst_25 : f32 to vector<4x32xf32>
    %46 = arith.select %44, %45, %38 : vector<4x32xi1>, vector<4x32xf32>
    %47 = tpu.concatenate %42, %46 in 0 : vector<4x32xf32>, vector<4x32xf32> -> vector<8x32xf32>
    %48 = arith.truncf %47 : vector<8x32xf32> to vector<8x32xbf16>
    %c0_26 = arith.constant 0 : index
    %c0_27 = arith.constant 0 : index
    %49 = vector.load %arg7[%c0_26, %c0_27] : memref<64x8xbf16, #tpu.memory_space<vmem>>, vector<64x8xbf16>
    %cst_28 = arith.constant dense<0.000000e+00> : vector<64x32xf32>
    %50 = tpu.matmul %49, %48, %cst_28 {dimension_numbers = #tpu.dot_dimension_numbers<[1], [0], [0], [1], [0, 0, 1, 1], [], []>} : vector<64x8xbf16>, vector<8x32xbf16>, vector<64x32xf32> -> vector<64x32xf32>
    %51 = arith.negf %50 : vector<64x32xf32>
    %52 = math.exp %51 : vector<64x32xf32>
    %cst_29 = arith.constant 1.000000e+00 : f32
    %53 = vector.broadcast %cst_29 : f32 to vector<64x32xf32>
    %54 = arith.addf %53, %52 : vector<64x32xf32>
    %55 = arith.divf %53, %54 : vector<64x32xf32>
    %56 = tpu.concatenate %29, %55 in 0 : vector<64x32xf32>, vector<64x32xf32> -> vector<128x32xf32>
    %57 = arith.truncf %56 : vector<128x32xf32> to vector<128x32xbf16>
    %c0_30 = arith.constant 0 : index
    %c0_31 = arith.constant 0 : index
    %58 = vector.load %arg3[%c0_30, %c0_31] : memref<32x256xbf16, #tpu.memory_space<vmem>>, vector<32x256xbf16>
    %cst_32 = arith.constant dense<0.000000e+00> : vector<128x256xf32>
    %59 = tpu.matmul %57, %58, %cst_32 {dimension_numbers = #tpu.dot_dimension_numbers<[1], [0], [0], [1], [0, 0, 1, 1], [], []>} : vector<128x32xbf16>, vector<32x256xbf16>, vector<128x256xf32> -> vector<128x256xf32>
    %c0_33 = arith.constant 0 : index
    %c0_34 = arith.constant 0 : index
    %60 = vector.load %arg4[%c0_33, %c0_34] : memref<32x256xbf16, #tpu.memory_space<vmem>>, vector<32x256xbf16>
    %cst_35 = arith.constant dense<0.000000e+00> : vector<128x256xf32>
    %61 = tpu.matmul %57, %60, %cst_35 {dimension_numbers = #tpu.dot_dimension_numbers<[1], [0], [0], [1], [0, 0, 1, 1], [], []>} : vector<128x32xbf16>, vector<32x256xbf16>, vector<128x256xf32> -> vector<128x256xf32>
    %62 = arith.extf %0 : vector<128x256xbf16> to vector<128x256xf32>
    %63 = arith.mulf %62, %59 : vector<128x256xf32>
    %64 = arith.mulf %63, %61 : vector<128x256xf32>
    %c0_36 = arith.constant 0 : index
    %c0_37 = arith.constant 0 : index
    %65 = vector.load %arg8[%c0_36, %c0_37] : memref<128x256xf32, #tpu.memory_space<vmem>>, vector<128x256xf32>
    tpu.vector_store %arg8[%c0_36, %c0_37], %64 {strides = array<i32>} : memref<128x256xf32, #tpu.memory_space<vmem>>, vector<128x256xf32>,
    return
  }
  func.func @transform_0(%arg0: i32) -> (i32, i32) {
    %c0_i32 = arith.constant 0 : i32
    %c0_i32_0 = arith.constant 0 : i32
    %c0_i32_1 = arith.constant 0 : i32
    return %c0_i32, %c0_i32_0 : i32, i32
  }
  func.func @transform_1(%arg0: i32) -> (i32, i32) {
    %c0_i32 = arith.constant 0 : i32
    %c0_i32_0 = arith.constant 0 : i32
    %c0_i32_1 = arith.constant 0 : i32
    return %c0_i32, %c0_i32_0 : i32, i32
  }
  func.func @transform_2(%arg0: i32) -> (i32, i32) {
    %c0_i32 = arith.constant 0 : i32
    %c0_i32_0 = arith.constant 0 : i32
    %c0_i32_1 = arith.constant 0 : i32
    return %c0_i32, %c0_i32_0 : i32, i32
  }
  func.func @transform_3(%arg0: i32) -> (i32, i32) {
    %c0_i32 = arith.constant 0 : i32
    %c0_i32_0 = arith.constant 0 : i32
    %c0_i32_1 = arith.constant 0 : i32
    return %c0_i32, %c0_i32_0 : i32, i32
  }
  func.func @transform_4(%arg0: i32) -> (i32, i32) {
    %c0_i32 = arith.constant 0 : i32
    %c0_i32_0 = arith.constant 0 : i32
    %c0_i32_1 = arith.constant 0 : i32
    return %c0_i32, %c0_i32_0 : i32, i32
  }
  func.func @transform_5(%arg0: i32) -> (i32, i32) {
    %c0_i32 = arith.constant 0 : i32
    %c0_i32_0 = arith.constant 0 : i32
    %c0_i32_1 = arith.constant 0 : i32
    return %c0_i32, %c0_i32_0 : i32, i32
  }
  func.func @transform_6(%arg0: i32) -> (i32, i32) {
    %c0_i32 = arith.constant 0 : i32
    %c0_i32_0 = arith.constant 0 : i32
    %c0_i32_1 = arith.constant 0 : i32
    return %c0_i32, %c0_i32_0 : i32, i32
  }
  func.func @transform_7(%arg0: i32) -> (i32, i32) {
    %c0_i32 = arith.constant 0 : i32
    %c0_i32_0 = arith.constant 0 : i32
    %c0_i32_1 = arith.constant 0 : i32
    return %c0_i32, %c0_i32_0 : i32, i32
  }
}

</mosaic_0001>

<bundles_post_ra>
// kernel: tpu_custom_call.1
= control target key start
LH: loop header
LB: loop body
LE: loop exit
PB: predicated region body
PF: predicated region fallthrough
CT: control target
= control target key end

     0   :  { %12 = vsyncpa [#allocation3], 0  ;;  %s2030_s0 = inlined_call_operand.vmem [shape: bf16[128,256], index: 0, kind: input, shape index: {}]   ;;  %s2031_s1 = inlined_call_operand.vmem [shape: bf16[256,32], index: 1, kind: input, shape index: {}]   ;;  %s2032_s2 = inlined_call_operand.vmem [shape: bf16[32,256], index: 2, kind: input, shape index: {}]   ;;  %s2033_s3 = inlined_call_operand.hbm [shape: bf16[32,256], index: 3, kind: input, shape index: {}]   ;;  %s2034_s4 = inlined_call_operand.vmem [shape: bf16[4,64], index: 4, kind: input, shape index: {}]   ;;  %s2035_s5 = inlined_call_operand.vmem [shape: f32[4,1], index: 5, kind: input, shape index: {}]   ;;  %s2036_s6 = inlined_call_operand.vmem [shape: bf16[64,8], index: 6, kind: input, shape index: {}]   ;;  %s2037_s7 = inlined_call_operand.hbm [shape: f32[128,256], index: 7, kind: output, shape index: {}]  }
   0x1   :  { %13 = vsyncpa [#allocation4], 0  ;;  %s1597_s24 = smov [#allocation2]   ;;  %s1549_s28 = scalar_lea.hbm %s2033_s3, 512 }
   0x2   :  { %s25_s25 = sshll.u32 %s1597_s24, 4  ;;  %p1550_p0 = scmp.ne.s32.totalorder %s2033_s3, %s1549_s28  ;;  %s26_s25 = int_to_ptr.vmem [resolvable:$true] %s25_s25 }
   0x3   :  { %p1553_p1 = scmp.lt.u32.totalorder %s1549_s28, %s2033_s3 }
   0x5   :  { %p1555_p2 = pnand %p1553_p1, %p1550_p0 }
   0x7   :  { %1558 = shalt.err (!%p1555_p2)
}
   0x8   :  { %s1559_s10 = scalar_lea.vmem %s26_s25, 512  ;;  %p1564_p4 = scmp.lt.s32.totalorder %s26_s25, %s26_s25 }
   0x9   :  { %p1560_p3 = scmp.ne.s32.totalorder %s26_s25, %s1559_s10  ;;  %p1565_p5 = scmp.lt.s32.totalorder %s1559_s10, %s1559_s10 }
   0xb   :  { %p1566_p6 = por %p1565_p5, %p1564_p4 }
   0xd   :  { %p1567_p7 = pnand %p1566_p6, %p1560_p3 }
   0xf   :  { %1570 = shalt.err (!%p1567_p7)
}
  0x10   :  { %s1598_s11 = smov 128   ;;  %s1599_s12 = smov 8  }
  0x11   :  { %31 = dma.hbm_to_vmem [thread:$0]  %s2033_s3, 512, %s26_s25, [#allocation3], %s1598_s11, %s1598_s11, %s1599_s12  }
  0x12   :  { %1593 = dma.done.wait [#allocation3], 512  }
  0x13   :  { %1594 = vsyncadd [#allocation3], 4294966784  ;;  %v1437_v0 = vld [vmem:[%s2031_s1 + $0x40] sm:$0xff]   ;;  %v1439_v2 = vld [vmem:[%s2031_s1 + $0x48] sm:$0xff]   ;;  %v1600_v32 = vmov 0.0   ;;  %vm1601_vm0 = vmmov 0  }
  0x14   :  { %v1438_v1 = vld [vmem:[%s2031_s1] sm:$0xff]   ;;  %1293 = vmatprep.subr.bf16.mxu0 %v1437_v0  ;;  %v1440_v3 = vld [vmem:[%s2031_s1 + $0x8] sm:$0xff]   ;;  %v1441_v4 = vld [vmem:[%s2031_s1 + $0x50] sm:$0xff]   ;;  %1377 = vmatprep.subr.bf16.mxu1 %v1600_v32  ;;  %v1602_v44 = vmov 0   ;;  %vm376_vm1 = vcmask 523264   ;;  %vm458_vm2 = vcmask 64512  }
  0x15   :  { %1294 = vmatpush3.bf16.msra.mxu0 %v1438_v1  ;;  %v1442_v5 = vld [vmem:[%s2031_s1 + $0x10] sm:$0xff]   ;;  %v1443_v6 = vld [vmem:[%s2031_s1 + $0x58] sm:$0xff]   ;;  %v1445_v8 = vld [vmem:[%s2031_s1 + $0x60] sm:$0xff]   ;;  %1385 = vmatprep.mubr.msk.bf16.mxu1 %vm1601_vm0, %v1600_v32  ;;  %vm427_vm4 = vcmask 1043456   ;;  %vm787_vm5 = vcmask 261120  }
  0x16   :  { %1295 = vmatprep.subr.bf16.mxu0 %v1439_v2  ;;  %v1444_v7 = vld [vmem:[%s2031_s1 + $0x18] sm:$0xff]   ;;  %v1446_v9 = vld [vmem:[%s2031_s1 + $0x20] sm:$0xff]   ;;  %v1447_v10 = vld [vmem:[%s2031_s1 + $0x68] sm:$0xff]   ;;  %1436 = vset.pattern.permute.xlu0 %v1602_v44 }
  0x17   :  { %v1694_v11 = vld [vmem:[%s2030_s0] sm:$0xff]  ;;  %v1699_v12 = vld [vmem:[%s2030_s0 + $0x8] sm:$0xff]  ;;  %v1449_v15 = vld [vmem:[%s2031_s1 + $0x70] sm:$0xff]  }
  0x18   :  { %v1208_v13 = vcombine.high %v1694_v11, %v1699_v12  ;;  %v1448_v14 = vld [vmem:[%s2031_s1 + $0x28] sm:$0xff]   ;;  %v1450_v16 = vld [vmem:[%s2031_s1 + $0x30] sm:$0xff]   ;;  %v1451_v17 = vld [vmem:[%s2031_s1 + $0x78] sm:$0xff]   ;;  %v1207_v21 = vcombine.low %v1694_v11, %v1699_v12 }
  0x19   :  { %1296 = vmatpush3.bf16.msra.mxu0 %v1440_v3  ;;  %v1452_v18 = vld [vmem:[%s2031_s1 + $0x38] sm:$0xff]   ;;  %v1721_v19 = vld [vmem:[%s2030_s0 + $0x10] sm:$0xff]  ;;  %v1735_v23 = vld [vmem:[%s2030_s0 + $0x20] sm:$0xff] }
  0x1a   :  { %1297 = vmatprep.subr.bf16.mxu0 %v1441_v4  ;;  %298 = vmatprep.mubr.bf16.mxu0 %v1208_v13  ;;  %v1726_v20 = vld [vmem:[%s2030_s0 + $0x18] sm:$0xff]  ;;  %v1740_v24 = vld [vmem:[%s2030_s0 + $0x28] sm:$0xff]  ;;  %v1749_v27 = vld [vmem:[%s2030_s0 + $0x30] sm:$0xff] }
  0x1b   :  { %v1210_v22 = vcombine.high %v1721_v19, %v1726_v20  ;;  %v1209_v25 = vcombine.low %v1721_v19, %v1726_v20  ;;  %v1212_v26 = vcombine.high %v1735_v23, %v1740_v24  ;;  %v1754_v28 = vld [vmem:[%s2030_s0 + $0x38] sm:$0xff]  ;;  %v1211_v29 = vcombine.low %v1735_v23, %v1740_v24  ;;  %v1766_v33 = vld [vmem:[%s2030_s0 + $0x40] sm:$0xff]  ;;  %v1771_v34 = vld [vmem:[%s2030_s0 + $0x48] sm:$0xff] }
  0x1c   :  { %v1214_v30 = vcombine.high %v1749_v27, %v1754_v28  ;;  %v1213_v31 = vcombine.low %v1749_v27, %v1754_v28  ;;  %v1216_v35 = vcombine.high %v1766_v33, %v1771_v34  ;;  %v1215_v36 = vcombine.low %v1766_v33, %v1771_v34  ;;  %v1780_v37 = vld [vmem:[%s2030_s0 + $0x50] sm:$0xff]  ;;  %v1785_v38 = vld [vmem:[%s2030_s0 + $0x58] sm:$0xff]  ;;  %v1796_v41 = vld [vmem:[%s2030_s0 + $0x60] sm:$0xff] }
  0x1d   :  { %1298 = vmatpush3.bf16.msra.mxu0 %v1442_v5  ;;  %v1218_v39 = vcombine.high %v1780_v37, %v1785_v38  ;;  %v1217_v40 = vcombine.low %v1780_v37, %v1785_v38  ;;  %v1801_v42 = vld [vmem:[%s2030_s0 + $0x68] sm:$0xff]  ;;  %v370_v45 = vld [vmem:[%s2035_s5] sm:$0xf]  ;;  %v1812_v46 = vld [vmem:[%s2030_s0 + $0x70] sm:$0xff] }
  0x1e   :  { %1299 = vmatprep.subr.bf16.mxu0 %v1443_v6  ;;  %v1220_v43 = vcombine.high %v1796_v41, %v1801_v42  ;;  %373 = vperm.xlu0 %1436, %v370_v45   ;;  %v1817_v47 = vld [vmem:[%s2030_s0 + $0x78] sm:$0xff]  ;;  %v1219_v48 = vcombine.low %v1796_v41, %v1801_v42 }
  0x1f   :  { %v1222_v49 = vcombine.high %v1812_v46, %v1817_v47  ;;  %v1221_v50 = vcombine.low %v1812_v46, %v1817_v47 }
  0x21   :  { %1300 = vmatpush3.bf16.msra.mxu0 %v1444_v7 }
  0x22   :  { %1301 = vmatprep.subr.bf16.mxu0 %v1445_v8 }
  0x25   :  { %1302 = vmatpush3.bf16.msra.mxu0 %v1446_v9 }
  0x26   :  { %1303 = vmatprep.subr.bf16.mxu0 %v1447_v10 }
  0x29   :  { %1304 = vmatpush3.bf16.msra.mxu0 %v1448_v14 }
  0x2a   :  { %1305 = vmatprep.subr.bf16.mxu0 %v1449_v15 }
  0x2d   :  { %1306 = vmatpush3.bf16.msra.mxu0 %v1450_v16 }
  0x2e   :  { %1307 = vmatprep.subr.bf16.mxu0 %v1451_v17  ;;  %v1832_v17 = vld [vmem:[%s2034_s4] sm:$0x3] }
  0x31   :  { %1308 = vmatpush3.bf16.msra.mxu0 %v1452_v18 }
  0x34   :  { %299 = vmatmul.mubr.bf16.vlgmr.msra.gmra.mrb[0].mxu0 %v1207_v21 }
  0x35   :  { %306 = vmatprep.mubr.bf16.mxu0 %v1210_v22 }
  0x3c   :  { %307 = vmatmul.mubr.bf16.gmra.mrb[4].mxu0 %v1209_v25 }
  0x3d   :  { %314 = vmatprep.mubr.bf16.mxu0 %v1212_v26 }
  0x44   :  { %315 = vmatmul.mubr.bf16.gmra.mrb[8].mxu0 %v1211_v29 }
  0x45   :  { %322 = vmatprep.mubr.bf16.mxu0 %v1214_v30 }
  0x4c   :  { %323 = vmatmul.mubr.bf16.gmra.mrb[12].mxu0 %v1213_v31 }
  0x4d   :  { %330 = vmatprep.mubr.bf16.mxu0 %v1216_v35 }
  0x54   :  { %331 = vmatmul.mubr.bf16.gmra.mrb[16].mxu0 %v1215_v36 }
  0x55   :  { %338 = vmatprep.mubr.bf16.mxu0 %v1218_v39 }
  0x5c   :  { %339 = vmatmul.mubr.bf16.gmra.mrb[20].mxu0 %v1217_v40 }
  0x5d   :  { %346 = vmatprep.mubr.bf16.mxu0 %v1220_v43 }
  0x64   :  { %347 = vmatmul.mubr.bf16.gmra.mrb[24].mxu0 %v1219_v48 }
  0x65   :  { %354 = vmatprep.mubr.bf16.mxu0 %v1222_v49 }
  0x6c   :  { %355 = vmatmul.mubr.bf16.gmra.mrb[28].mxu0 %v1221_v50 }
  0x6d   :  { %981 = vmatprep.mubr.bf16.mxu0 %v1602_v44 }
 0x107   :  { %v1309_v51 = vpop.f32.mrb[0].mxu0 }
 0x108   :  { %v1310_v52 = vpop.f32.mrb[1].mxu0 }
 0x109   :  { %v1311_v53 = vadd.f32 %v1310_v52, %v1309_v51  ;;  %v1312_v54 = vpop.f32.mrb[2].mxu0 }
 0x10a   :  { %v1313_v55 = vpop.f32.mrb[3].mxu0 }
 0x10b   :  { %v1314_v56 = vadd.f32 %v1313_v55, %v1312_v54 }
 0x10d   :  { %v365_v57 = vpack.c.bf16 %v1314_v56, %v1311_v53  ;;  %v1469_v53 = vld [vmem:[%s2036_s6] sm:$0xff]  }
 0x10f   :  { %v1315_v58 = vpop.f32.mrb[4].mxu0  ;;  %1378 = vmatpush3.bf16.msra.mxu1 %v365_v57 }
 0x110   :  { %v1316_v59 = vpop.f32.mrb[5].mxu0  ;;  %1379 = vmatprep.subr.bf16.mxu1 %v1600_v32 }
 0x111   :  { %v1317_v60 = vadd.f32 %v1316_v59, %v1315_v58  ;;  %v1318_v61 = vpop.f32.mrb[6].mxu0 }
 0x112   :  { %v1319_v62 = vpop.f32.mrb[7].mxu0 }
 0x113   :  { %v1320_v63 = vadd.f32 %v1319_v62, %v1318_v61 }
 0x115   :  { %v366_v0 = vpack.c.bf16 %v1320_v63, %v1317_v60  ;;  %v363_v63 = vlaneseq }
 0x117   :  { %v1321_v1 = vpop.f32.mrb[8].mxu0  ;;  %1380 = vmatpush3.bf16.msra.mxu1 %v366_v0  ;;  %v1840_v0 = vpop.permute.xlu0 %373 }
 0x118   :  { %v1322_v2 = vpop.f32.mrb[9].mxu0  ;;  %1381 = vmatprep.subr.bf16.mxu1 %v1600_v32 }
 0x119   :  { %v1323_v3 = vadd.f32 %v1322_v2, %v1321_v1  ;;  %v1324_v4 = vpop.f32.mrb[10].mxu0  ;;  %v1842_v1 = vand.u32 127, %v363_v63 }
 0x11a   :  { %v1325_v5 = vpop.f32.mrb[11].mxu0 }
 0x11b   :  { %v1326_v6 = vadd.f32 %v1325_v5, %v1324_v4  ;;  %vm421_vm3 = vcmp.lt.s32.totalorder %v1842_v1, 16 }
 0x11d   :  { %v367_v7 = vpack.c.bf16 %v1326_v6, %v1323_v3 }
 0x11f   :  { %v1327_v8 = vpop.f32.mrb[12].mxu0  ;;  %1382 = vmatpush3.bf16.msra.mxu1 %v367_v7 }
 0x120   :  { %v1328_v9 = vpop.f32.mrb[13].mxu0  ;;  %1383 = vmatprep.subr.bf16.mxu1 %v1600_v32 }
 0x121   :  { %v1329_v10 = vadd.f32 %v1328_v9, %v1327_v8  ;;  %v1330_v13 = vpop.f32.mrb[14].mxu0 }
 0x122   :  { %v1331_v14 = vpop.f32.mrb[15].mxu0 }
 0x123   :  { %v1332_v15 = vadd.f32 %v1331_v14, %v1330_v13 }
 0x125   :  { %v368_v16 = vpack.c.bf16 %v1332_v15, %v1329_v10 }
 0x127   :  { %1384 = vmatpush3.bf16.msra.mxu1 %v368_v16  ;;  %v1333_v18 = vpop.f32.mrb[16].mxu0  ;;  %v1856_v16 = vld [vmem:[%s2036_s6 + $0x8] sm:$0xff]  }
 0x128   :  { %v1334_v21 = vpop.f32.mrb[17].mxu0 }
 0x129   :  { %v1335_v22 = vadd.f32 %v1334_v21, %v1333_v18  ;;  %v1336_v25 = vpop.f32.mrb[18].mxu0  ;;  %v1861_v18 = vld [vmem:[%s2036_s6 + $0x10] sm:$0xff]   ;;  %v1872_v21 = vld [vmem:[%s2036_s6 + $0x18] sm:$0xff]  }
 0x12a   :  { %1386 = vmatmul.mubr.msk.bf16.vlgmr.msra.gmra.mrb[0].mxu1 %vm376_vm1, %v1832_v17  ;;  %v1337_v26 = vpop.f32.mrb[19].mxu0 }
 0x12b   :  { %v1338_v29 = vadd.f32 %v1337_v26, %v1336_v25  ;;  %1391 = vmatprep.mubr.msk.bf16.mxu1 %vm458_vm2, %v1469_v53  ;;  %v1885_v25 = vld [vmem:[#allocation2] ss:$8 sps:$4 sm:$0xff]   ;;  %v1889_v26 = vld [vmem:[#allocation2 + $0x14] ss:$8 sps:$4 sm:$0xff]  }
 0x12d   :  { %v587_v30 = vpack.c.bf16 %v1338_v29, %v1335_v22  ;;  %v1883_v22 = vld [vmem:[#allocation2 + $0x4] ss:$8 sps:$4 sm:$0xff]   ;;  %v1891_v29 = vld [vmem:[#allocation2 + $0x10] ss:$8 sps:$4 sm:$0xff]  }
 0x12e   :  { %949 = vmatprep.subr.bf16.mxu0 %v1883_v22 }
 0x12f   :  { %v1339_v31 = vpop.f32.mrb[20].mxu0  ;;  %950 = vmatpush1.bf16.msra.mxu0 %v1885_v25 }
 0x130   :  { %v1340_v35 = vpop.f32.mrb[21].mxu0  ;;  %951 = vmatprep.subr.bf16.mxu0 %v1889_v26 }
 0x131   :  { %v1342_v36 = vpop.f32.mrb[22].mxu0  ;;  %v1341_v40 = vadd.f32 %v1340_v35, %v1339_v31 }
 0x132   :  { %v1343_v39 = vpop.f32.mrb[23].mxu0 }
 0x133   :  { %v1344_v43 = vadd.f32 %v1343_v39, %v1342_v36  ;;  %952 = vmatpush1.bf16.msra.mxu0 %v1891_v29 }
 0x135   :  { %v588_v45 = vpack.c.bf16 %v1344_v43, %v1341_v40 }
 0x137   :  { %v1345_v48 = vpop.f32.mrb[24].mxu0 }
 0x138   :  { %v1346_v49 = vpop.f32.mrb[25].mxu0 }
 0x139   :  { %v1347_v50 = vadd.f32 %v1346_v49, %v1345_v48  ;;  %v1348_v51 = vpop.f32.mrb[26].mxu0 }
 0x13a   :  { %v1349_v52 = vpop.f32.mrb[27].mxu0 }
 0x13b   :  { %v1350_v54 = vadd.f32 %v1349_v52, %v1348_v51 }
 0x13d   :  { %v589_v55 = vpack.c.bf16 %v1350_v54, %v1347_v50 }
 0x13f   :  { %v1351_v56 = vpop.f32.mrb[28].mxu0 }
 0x140   :  { %v1352_v57 = vpop.f32.mrb[29].mxu0 }
 0x141   :  { %v1353_v58 = vadd.f32 %v1352_v57, %v1351_v56  ;;  %v1354_v59 = vpop.f32.mrb[30].mxu0 }
 0x142   :  { %v1355_v60 = vpop.f32.mrb[31].mxu0 }
 0x143   :  { %v1356_v61 = vadd.f32 %v1355_v60, %v1354_v59 }
 0x145   :  { %v590_v62 = vpack.c.bf16 %v1356_v61, %v1353_v58 }
 0x1fd   :  { %v414_v2 = vpop.f32.mrb[0].mxu1 }
 0x1fe   :  { %v415_v3 = vadd.f32 %v414_v2, %v1840_v0  ;;  %v1387_v4 = vpop.f32.mrb[1].mxu1 }
 0x1ff   :  { %v417_v5 = vpop.f32.mrb[2].mxu1 }
 0x200   :  { %v420_v6 = vmax.f32 %v415_v3, 0.0  ;;  %v1388_v7 = vpop.f32.mrb[3].mxu1 }
 0x202   :  { %v423_v8 = vsel %vm421_vm3, 0.0, %v420_v6  ;;  %v422_v10 = vsel %vm421_vm3, %v420_v6, 0.0 }
 0x203   :  { %v425_v9 = vrot.slane %v423_v8, 4 }
 0x205   :  { %v428_v13 = vsel %vm427_vm4, %v422_v10, %v425_v9 }
 0x206   :  { %v429_v14 = vpack.c.bf16 %v428_v13, %v428_v13 }
 0x208   :  { %1425 = vmatprep.subr.msk.bf16.mxu1 %vm427_vm4, %v429_v14  ;;  %v472_v15 = vsel %vm427_vm4, %v429_v14, 0 }
 0x209   :  { %1390 = vmatpush3.bf16.msra.mxu1 %v472_v15 }
 0x20a   :  { %1399 = vmatprep.subr.bf16.mxu1 %v1600_v32 }
 0x20c   :  { %1392 = vmatmul.mubr.msk.bf16.vlgmr.msra.gmra.mrb[4].mxu1 %vm458_vm2, %v1856_v16 }
 0x20d   :  { %1400 = vmatpush3.bf16.msra.mxu1 %v587_v30  ;;  %1395 = vmatprep.mubr.msk.bf16.mxu1 %vm458_vm2, %v1861_v18 }
 0x20e   :  { %1401 = vmatprep.subr.bf16.mxu1 %v1600_v32 }
 0x211   :  { %1402 = vmatpush3.bf16.msra.mxu1 %v588_v45 }
 0x212   :  { %1403 = vmatprep.subr.bf16.mxu1 %v1600_v32 }
 0x214   :  { %1396 = vmatmul.mubr.msk.bf16.gmra.mrb[8].mxu1 %vm458_vm2, %v1872_v21 }
 0x215   :  { %1404 = vmatpush3.bf16.msra.mxu1 %v589_v55  ;;  %1407 = vmatprep.mubr.msk.bf16.mxu1 %vm1601_vm0, %v1600_v32 }
 0x216   :  { %1405 = vmatprep.subr.bf16.mxu1 %v1600_v32 }
 0x219   :  { %1406 = vmatpush3.bf16.msra.mxu1 %v590_v62 }
 0x21c   :  { %1408 = vmatmul.mubr.msk.bf16.vlgmr.msra.gmra.mrb[12].mxu1 %vm376_vm1, %v1832_v17 }
 0x21d   :  { %1413 = vmatprep.mubr.msk.bf16.mxu1 %vm458_vm2, %v1469_v53 }
 0x2df   :  { %v1393_v32 = vpop.f32.mrb[4].mxu1 }
 0x2e0   :  { %v1250_v17 = vmul.f32 -1.442695, %v1393_v32  ;;  %v508_v30 = vpop.f32.mrb[5].mxu1 }
 0x2e1   :  { %v1248_v31 = vmul.f32 -1.442695, %v508_v30  ;;  %v1394_v35 = vpop.f32.mrb[6].mxu1 }
 0x2e2   :  { %1485 = vpow2.f32 %v1250_v17  ;;  %v1251_v36 = vmul.f32 -1.442695, %v1394_v35  ;;  %v511_v39 = vpop.f32.mrb[7].mxu1  ;;  %v1481_v35 = vld [vmem:[%s2032_s2 + $0x4] ss:$8 sps:$4 sm:$0xff]  }
 0x2e3   :  { %1487 = vpow2.f32 %v1248_v31  ;;  %v1249_v40 = vmul.f32 -1.442695, %v511_v39 }
 0x2e4   :  { %1489 = vpow2.f32 %v1251_v36 }
 0x2e5   :  { %1491 = vpow2.f32 %v1249_v40 }
 0x2e7   :  { %v1397_v43 = vpop.f32.mrb[8].mxu1 }
 0x2e8   :  { %v1254_v45 = vmul.f32 -1.442695, %v1397_v43  ;;  %v524_v48 = vpop.f32.mrb[9].mxu1 }
 0x2e9   :  { %v1252_v49 = vmul.f32 -1.442695, %v524_v48  ;;  %v1398_v50 = vpop.f32.mrb[10].mxu1 }
 0x2ea   :  { %1493 = vpow2.f32 %v1254_v45  ;;  %v1255_v51 = vmul.f32 -1.442695, %v1398_v50  ;;  %v527_v52 = vpop.f32.mrb[11].mxu1  ;;  %v1479_v45 = vld [vmem:[%s2032_s2] ss:$8 sps:$4 sm:$0xff]  }
 0x2eb   :  { %1495 = vpow2.f32 %v1252_v49  ;;  %v1253_v53 = vmul.f32 -1.442695, %v527_v52  ;;  %v1484_v50 = vld [vmem:[%s2032_s2 + $0x14] ss:$8 sps:$4 sm:$0xff]  }
 0x2ec   :  { %v1486_v54 = vpop.eup %1485  ;;  %1497 = vpow2.f32 %v1255_v51  ;;  %v1482_v51 = vld [vmem:[%s2032_s2 + $0x10] ss:$8 sps:$4 sm:$0xff]   ;;  %s1603_s2 = smov [#allocation5]  }
 0x2ed   :  { %v1488_v55 = vpop.eup %1487  ;;  %v565_v56 = vadd.f32 1.0, %v1486_v54  ;;  %1499 = vpow2.f32 %v1253_v53  ;;  %s1195_s21 = sshll.u32 %s1603_s2, 4  ;;  %s1196_s21 = int_to_ptr.vmem [resolvable:$true] %s1195_s21 }
 0x2ee   :  { %v1490_v57 = vpop.eup %1489  ;;  %v563_v58 = vadd.f32 1.0, %v1488_v55  ;;  %s1571_s22 = scalar_lea.vmem %s1196_s21, 4096  ;;  %p1576_p9 = scmp.lt.s32.totalorder %s1196_s21, %s1196_s21 }
 0x2ef   :  { %v1492_v59 = vpop.eup %1491  ;;  %1501 = vrcp.f32 %v565_v56  ;;  %v566_v60 = vadd.f32 1.0, %v1490_v57  ;;  %v625_v61 = vpop.f32.mrb[12].mxu1  ;;  %p1572_p8 = scmp.ne.s32.totalorder %s1196_s21, %s1571_s22  ;;  %p1577_p10 = scmp.lt.s32.totalorder %s1571_s22, %s1571_s22 }
 0x2f0   :  { %1503 = vrcp.f32 %v563_v58  ;;  %v564_v62 = vadd.f32 1.0, %v1492_v59  ;;  %v626_v63 = vadd.f32 %v625_v61, %v1840_v0  ;;  %v1409_v2 = vpop.f32.mrb[13].mxu1 }
 0x2f1   :  { %1505 = vrcp.f32 %v566_v60  ;;  %v628_v3 = vpop.f32.mrb[14].mxu1  ;;  %p1578_p11 = por %p1577_p10, %p1576_p9 }
 0x2f2   :  { %1507 = vrcp.f32 %v564_v62  ;;  %v631_v4 = vmax.f32 %v626_v63, 0.0  ;;  %v1410_v5 = vpop.f32.mrb[15].mxu1 }
 0x2f3   :  { %p1579_p12 = pnand %p1578_p11, %p1572_p8 }
 0x2f4   :  { %v1494_v6 = vpop.eup %1493  ;;  %v633_v7 = vsel %vm421_vm3, 0.0, %v631_v4  ;;  %v632_v15 = vsel %vm421_vm3, %v631_v4, 0.0 }
 0x2f5   :  { %v1496_v8 = vpop.eup %1495  ;;  %v569_v9 = vadd.f32 1.0, %v1494_v6  ;;  %v635_v10 = vrot.slane %v633_v7, 4 }
 0x2f6   :  { %v1498_v13 = vpop.eup %1497  ;;  %v567_v14 = vadd.f32 1.0, %v1496_v8 }
 0x2f7   :  { %v1500_v32 = vpop.eup %1499  ;;  %1509 = vrcp.f32 %v569_v9  ;;  %v570_v0 = vadd.f32 1.0, %v1498_v13  ;;  %v637_v17 = vsel %vm427_vm4, %v632_v15, %v635_v10 }
 0x2f8   :  { %1511 = vrcp.f32 %v567_v14  ;;  %v568_v30 = vadd.f32 1.0, %v1500_v32  ;;  %v638_v31 = vpack.c.bf16 %v637_v17, %v637_v17  ;;  %v1062_v32 = vunpack.c.l.bf16 %v1694_v11 }
 0x2f9   :  { %v1502_v36 = vpop.eup %1501  ;;  %1513 = vrcp.f32 %v570_v0 }
 0x2fa   :  { %v1504_v39 = vpop.eup %1503  ;;  %1515 = vrcp.f32 %v568_v30  ;;  %1426 = vmatprep.subr.msk.bf16.mxu1 %vm427_vm4, %v638_v31  ;;  %v640_v1 = vsel %vm427_vm4, %v638_v31, 0  ;;  %v1063_v30 = vunpack.c.h.bf16 %v1694_v11 }
 0x2fb   :  { %v1506_v40 = vpop.eup %1505  ;;  %1412 = vmatpush3.bf16.msra.mxu1 %v640_v1 }
 0x2fc   :  { %v1508_v43 = vpop.eup %1507  ;;  %812 = vmatprep.subr.bf16.mxu1 %v1481_v35  ;;  %v756_v48 = vpack.c.bf16 %v1506_v40, %v1502_v36  ;;  %v1064_v36 = vunpack.c.l.bf16 %v1699_v12 }
 0x2fd   :  { %v755_v49 = vpack.c.bf16 %v1508_v43, %v1504_v39  ;;  %v1065_v43 = vunpack.c.h.bf16 %v1699_v12 }
 0x2fe   :  { %1414 = vmatmul.mubr.msk.bf16.vlgmr.msra.gmra.mrb[16].mxu1 %vm458_vm2, %v1856_v16 }
 0x2ff   :  { %1285 = vmatmul.mubr.msk.bf16.vlgmr.msra.gmra.mrb[32].mxu0 %vm787_vm5, %v755_v49  ;;  %1417 = vmatprep.mubr.msk.bf16.mxu1 %vm458_vm2, %v1861_v18 }
 0x300   :  { %991 = vmatprep.mubr.bf16.mxu0 %v1602_v44  ;;  %813 = vmatpush1.bf16.msra.mxu1 %v1479_v45 }
 0x301   :  { %v1510_v52 = vpop.eup %1509  ;;  %814 = vmatprep.subr.bf16.mxu1 %v1484_v50 }
 0x302   :  { %v1512_v53 = vpop.eup %1511 }
 0x303   :  { %v1514_v54 = vpop.eup %1513 }
 0x304   :  { %v1516_v55 = vpop.eup %1515  ;;  %815 = vmatpush1.bf16.msra.mxu1 %v1482_v51  ;;  %v758_v56 = vpack.c.bf16 %v1514_v54, %v1510_v52 }
 0x305   :  { %v757_v16 = vpack.c.bf16 %v1516_v55, %v1512_v53  ;;  %1421 = vmatprep.subr.bf16.mxu1 %v1883_v22 }
 0x306   :  { %1418 = vmatmul.mubr.msk.bf16.gmra.mrb[20].mxu1 %vm458_vm2, %v1872_v21 }
 0x307   :  { %1286 = vmatmul.mubr.msk.bf16.gmra.mrb[36].mxu0 %vm787_vm5, %v756_v48  ;;  %844 = vmatprep.mubr.bf16.mxu1 %v1602_v44 }
 0x308   :  { %1001 = vmatprep.mubr.bf16.mxu0 %v1602_v44 }
 0x30e   :  { %1273 = vmatmul.mubr.msk.bf16.vlgmr.msra.gmra.mrb[24].mxu1 %vm787_vm5, %v755_v49 }
 0x30f   :  { %1287 = vmatmul.mubr.msk.bf16.gmra.mrb[40].mxu0 %vm787_vm5, %v757_v16  ;;  %854 = vmatprep.mubr.bf16.mxu1 %v1602_v44 }
 0x310   :  { %1011 = vmatprep.mubr.bf16.mxu0 %v1602_v44  ;;  %1423 = vmatpush1.bf16.msra.mxu1 %v1885_v25 }
 0x311   :  { %1422 = vmatprep.subr.bf16.mxu1 %v1889_v26 }
 0x314   :  { %1424 = vmatpush1.bf16.msra.mxu1 %v1891_v29 }
 0x316   :  { %1274 = vmatmul.mubr.msk.bf16.gmra.mrb[28].mxu1 %vm787_vm5, %v756_v48 }
 0x317   :  { %1288 = vmatmul.mubr.msk.bf16.gmra.mrb[44].mxu0 %vm787_vm5, %v758_v56  ;;  %864 = vmatprep.mubr.bf16.mxu1 %v1602_v44 }
 0x318   :  { %1021 = vmatprep.mubr.bf16.mxu0 %v1602_v44 }
 0x31e   :  { %1275 = vmatmul.mubr.msk.bf16.gmra.mrb[32].mxu1 %vm787_vm5, %v757_v16 }
 0x31f   :  { %874 = vmatprep.mubr.bf16.mxu1 %v1602_v44 }
 0x326   :  { %1276 = vmatmul.mubr.msk.bf16.gmra.mrb[36].mxu1 %vm787_vm5, %v758_v56 }
 0x327   :  { %884 = vmatprep.mubr.bf16.mxu1 %v1602_v44 }
 0x3d1   :  { %v1415_v18 = vpop.f32.mrb[16].mxu1 }
 0x3d2   :  { %v1263_v21 = vmul.f32 -1.442695, %v1415_v18  ;;  %v676_v22 = vpop.f32.mrb[17].mxu1  ;;  %v983_v25 = vpop.f32.mrb[32].mxu0 }
 0x3d3   :  { %v1261_v26 = vmul.f32 -1.442695, %v676_v22  ;;  %v1416_v29 = vpop.f32.mrb[18].mxu1  ;;  %v985_v57 = vpop.f32.mrb[33].mxu0 }
 0x3d4   :  { %1517 = vpow2.f32 %v1263_v21  ;;  %v1264_v58 = vmul.f32 -1.442695, %v1416_v29  ;;  %v679_v59 = vpop.f32.mrb[19].mxu1  ;;  %v987_v60 = vpop.f32.mrb[34].mxu0 }
 0x3d5   :  { %1519 = vpow2.f32 %v1261_v26  ;;  %v1262_v61 = vmul.f32 -1.442695, %v679_v59  ;;  %v989_v62 = vpop.f32.mrb[35].mxu0  ;;  %v1066_v26 = vunpack.c.l.bf16 %v1721_v19 }
 0x3d6   :  { %1521 = vpow2.f32 %v1264_v58 }
 0x3d7   :  { %1523 = vpow2.f32 %v1262_v61  ;;  %v1067_v61 = vunpack.c.h.bf16 %v1721_v19 }
 0x3d9   :  { %v1419_v63 = vpop.f32.mrb[20].mxu1 }
 0x3da   :  { %v1942_v2 = vpop.f32.mrb[36].mxu0  ;;  %v1267_v3 = vmul.f32 -1.442695, %v1419_v63  ;;  %v692_v4 = vpop.f32.mrb[21].mxu1 }
 0x3db   :  { %v1944_v5 = vpop.f32.mrb[37].mxu0  ;;  %v1265_v6 = vmul.f32 -1.442695, %v692_v4  ;;  %v1420_v7 = vpop.f32.mrb[22].mxu1 }
 0x3dc   :  { %v1946_v8 = vpop.f32.mrb[38].mxu0  ;;  %1525 = vpow2.f32 %v1267_v3  ;;  %v1268_v9 = vmul.f32 -1.442695, %v1420_v7  ;;  %v695_v10 = vpop.f32.mrb[23].mxu1  ;;  %v1068_v3 = vunpack.c.l.bf16 %v1726_v20 }
 0x3dd   :  { %v1948_v13 = vpop.f32.mrb[39].mxu0  ;;  %1527 = vpow2.f32 %v1265_v6  ;;  %v1266_v14 = vmul.f32 -1.442695, %v695_v10 }
 0x3de   :  { %v1518_v15 = vpop.eup %1517  ;;  %1529 = vpow2.f32 %v1268_v9 }
 0x3df   :  { %v1520_v0 = vpop.eup %1519  ;;  %v733_v17 = vadd.f32 1.0, %v1518_v15  ;;  %1531 = vpow2.f32 %v1266_v14 }
 0x3e0   :  { %v1522_v31 = vpop.eup %1521  ;;  %v731_v35 = vadd.f32 1.0, %v1520_v0 }
 0x3e1   :  { %v1524_v39 = vpop.eup %1523  ;;  %1533 = vrcp.f32 %v733_v17  ;;  %v734_v1 = vadd.f32 1.0, %v1522_v31  ;;  %v846_v40 = vpop.f32.mrb[24].mxu1 }
 0x3e2   :  { %1535 = vrcp.f32 %v731_v35  ;;  %v732_v45 = vadd.f32 1.0, %v1524_v39  ;;  %v1094_v48 = vmul.f32 %v1062_v32, %v846_v40  ;;  %v848_v49 = vpop.f32.mrb[25].mxu1  ;;  %v1954_v50 = vpop.f32.mrb[40].mxu0 }
 0x3e3   :  { %1537 = vrcp.f32 %v734_v1  ;;  %v1095_v51 = vmul.f32 %v1063_v30, %v848_v49  ;;  %v850_v52 = vpop.f32.mrb[26].mxu1  ;;  %v1956_v11 = vpop.f32.mrb[41].mxu0 }
 0x3e4   :  { %1539 = vrcp.f32 %v732_v45  ;;  %v1126_v53 = vmul.f32 %v1094_v48, %v983_v25  ;;  %v1096_v54 = vmul.f32 %v1064_v36, %v850_v52  ;;  %v852_v55 = vpop.f32.mrb[27].mxu1  ;;  %v1958_v56 = vpop.f32.mrb[42].mxu0  ;;  %v1070_v45 = vunpack.c.l.bf16 %v1735_v23 }
 0x3e5   :  { %v1127_v16 = vmul.f32 %v1095_v51, %v985_v57  ;;  %v1097_v18 = vmul.f32 %v1065_v43, %v852_v55  ;;  %v1960_v12 = vpop.f32.mrb[43].mxu0  ;;  %v1072_v52 = vunpack.c.l.bf16 %v1740_v24 }
 0x3e6   :  { %v1526_v21 = vpop.eup %1525  ;;  %1158 = vst [vmem:[#allocation5] sm:$0xff] %v1126_v53  ;;  %v1128_v22 = vmul.f32 %v1096_v54, %v987_v60  ;;  %v1069_v60 = vunpack.c.h.bf16 %v1726_v20 }
 0x3e7   :  { %v1528_v29 = vpop.eup %1527  ;;  %v737_v58 = vadd.f32 1.0, %v1526_v21  ;;  %1159 = vst [vmem:[#allocation5 + $0x8] sm:$0xff] %v1127_v16  ;;  %v1129_v59 = vmul.f32 %v1097_v18, %v989_v62 }
 0x3e8   :  { %v1530_v25 = vpop.eup %1529  ;;  %v735_v63 = vadd.f32 1.0, %v1528_v29  ;;  %1160 = vst [vmem:[#allocation5 + $0x10] sm:$0xff] %v1128_v22 }
 0x3e9   :  { %v1532_v57 = vpop.eup %1531  ;;  %1541 = vrcp.f32 %v737_v58  ;;  %v738_v4 = vadd.f32 1.0, %v1530_v25  ;;  %1161 = vst [vmem:[#allocation5 + $0x18] sm:$0xff] %v1129_v59  ;;  %v856_v6 = vpop.f32.mrb[28].mxu1 }
 0x3ea   :  { %1543 = vrcp.f32 %v735_v63  ;;  %v736_v7 = vadd.f32 1.0, %v1532_v57  ;;  %v1098_v9 = vmul.f32 %v1066_v26, %v856_v6  ;;  %v858_v10 = vpop.f32.mrb[29].mxu1  ;;  %v1966_v14 = vpop.f32.mrb[44].mxu0 }
 0x3eb   :  { %v1534_v62 = vpop.eup %1533  ;;  %1545 = vrcp.f32 %v738_v4  ;;  %v1099_v19 = vmul.f32 %v1067_v61, %v858_v10  ;;  %v860_v15 = vpop.f32.mrb[30].mxu1  ;;  %v1074_v61 = vunpack.c.l.bf16 %v1749_v27 }
 0x3ec   :  { %v1968_v32 = vpop.f32.mrb[45].mxu0  ;;  %v1536_v0 = vpop.eup %1535  ;;  %1547 = vrcp.f32 %v736_v7  ;;  %v1130_v17 = vmul.f32 %v1098_v9, %v1942_v2  ;;  %v1100_v30 = vmul.f32 %v1068_v3, %v860_v15  ;;  %v1071_v2 = vunpack.c.h.bf16 %v1735_v23 }
 0x3ed   :  { %v862_v31 = vpop.f32.mrb[31].mxu1  ;;  %v1017_v35 = vpop.f32.mrb[46].mxu0  ;;  %v1131_v36 = vmul.f32 %v1099_v19, %v1944_v5  ;;  %v1075_v3 = vunpack.c.h.bf16 %v1749_v27 }
 0x3ee   :  { %v1538_v20 = vpop.eup %1537  ;;  %v1101_v39 = vmul.f32 %v1069_v60, %v862_v31  ;;  %v1019_v1 = vpop.f32.mrb[47].mxu0  ;;  %1162 = vst [vmem:[#allocation5 + $0x20] sm:$0xff] %v1130_v17  ;;  %v1132_v43 = vmul.f32 %v1100_v30, %v1946_v8  ;;  %v1073_v8 = vunpack.c.h.bf16 %v1740_v24  ;;  %v1081_v30 = vunpack.c.h.bf16 %v1771_v34 }
 0x3ef   :  { %v1540_v40 = vpop.eup %1539  ;;  %v760_v48 = vpack.c.bf16 %v1538_v20, %v1534_v62  ;;  %1163 = vst [vmem:[#allocation5 + $0x28] sm:$0xff] %v1131_v36 }
 0x3f0   :  { %v1133_v49 = vmul.f32 %v1101_v39, %v1948_v13  ;;  %v759_v51 = vpack.c.bf16 %v1540_v40, %v1536_v0  ;;  %1164 = vst [vmem:[#allocation5 + $0x30] sm:$0xff] %v1132_v43 }
 0x3f1   :  { %v866_v5 = vpop.f32.mrb[32].mxu1 }
 0x3f2   :  { %1165 = vst [vmem:[#allocation5 + $0x38] sm:$0xff] %v1133_v49  ;;  %1277 = vmatmul.mubr.msk.bf16.gmra.mrb[40].mxu1 %vm787_vm5, %v759_v51  ;;  %1289 = vmatmul.mubr.msk.bf16.gmra.mrb[48].mxu0 %vm787_vm5, %v759_v51  ;;  %v1102_v53 = vmul.f32 %v1070_v45, %v866_v5  ;;  %v868_v54 = vpop.f32.mrb[33].mxu1  ;;  %v1082_v51 = vunpack.c.l.bf16 %v1780_v37 }
 0x3f3   :  { %894 = vmatprep.mubr.bf16.mxu1 %v1602_v44  ;;  %1031 = vmatprep.mubr.bf16.mxu0 %v1602_v44  ;;  %v1542_v13 = vpop.eup %1541  ;;  %v1103_v55 = vmul.f32 %v1071_v2, %v868_v54  ;;  %v870_v23 = vpop.f32.mrb[34].mxu1 }
 0x3f4   :  { %v1544_v16 = vpop.eup %1543  ;;  %v1134_v18 = vmul.f32 %v1102_v53, %v1954_v50  ;;  %v1104_v21 = vmul.f32 %v1072_v52, %v870_v23  ;;  %v872_v22 = vpop.f32.mrb[35].mxu1  ;;  %v1076_v50 = vunpack.c.l.bf16 %v1754_v28  ;;  %v1084_v52 = vunpack.c.l.bf16 %v1785_v38 }
 0x3f5   :  { %v1546_v26 = vpop.eup %1545  ;;  %v1135_v29 = vmul.f32 %v1103_v55, %v1956_v11  ;;  %v1105_v58 = vmul.f32 %v1073_v8, %v872_v22  ;;  %v1077_v11 = vunpack.c.h.bf16 %v1754_v28  ;;  %v1078_v28 = vunpack.c.l.bf16 %v1766_v33 }
 0x3f6   :  { %v1548_v59 = vpop.eup %1547  ;;  %1166 = vst [vmem:[#allocation5 + $0x40] sm:$0xff] %v1134_v18  ;;  %v1136_v24 = vmul.f32 %v1104_v21, %v1958_v56  ;;  %v762_v25 = vpack.c.bf16 %v1546_v26, %v1542_v13  ;;  %v1085_v53 = vunpack.c.h.bf16 %v1785_v38 }
 0x3f7   :  { %1167 = vst [vmem:[#allocation5 + $0x48] sm:$0xff] %v1135_v29  ;;  %v1137_v63 = vmul.f32 %v1105_v58, %v1960_v12  ;;  %v761_v57 = vpack.c.bf16 %v1548_v59, %v1544_v16 }
 0x3f8   :  { %1168 = vst [vmem:[#allocation5 + $0x50] sm:$0xff] %v1136_v24 }
 0x3f9   :  { %1169 = vst [vmem:[#allocation5 + $0x58] sm:$0xff] %v1137_v63  ;;  %v876_v4 = vpop.f32.mrb[36].mxu1 }
 0x3fa   :  { %1278 = vmatmul.mubr.msk.bf16.gmra.mrb[44].mxu1 %vm787_vm5, %v760_v48  ;;  %1290 = vmatmul.mubr.msk.bf16.gmra.mrb[52].mxu0 %vm787_vm5, %v760_v48  ;;  %v1106_v56 = vmul.f32 %v1074_v61, %v876_v4  ;;  %v878_v6 = vpop.f32.mrb[37].mxu1  ;;  %v1086_v4 = vunpack.c.l.bf16 %v1796_v41 }
 0x3fb   :  { %904 = vmatprep.mubr.bf16.mxu1 %v1602_v44  ;;  %v1107_v60 = vmul.f32 %v1075_v3, %v878_v6  ;;  %v880_v12 = vpop.f32.mrb[38].mxu1  ;;  %v1088_v6 = vunpack.c.l.bf16 %v1801_v42 }
 0x3fc   :  { %v1138_v27 = vmul.f32 %v1106_v56, %v1966_v14  ;;  %v1108_v7 = vmul.f32 %v1076_v50, %v880_v12  ;;  %v882_v9 = vpop.f32.mrb[39].mxu1  ;;  %v1079_v14 = vunpack.c.h.bf16 %v1766_v33  ;;  %v1087_v56 = vunpack.c.h.bf16 %v1796_v41 }
 0x3fd   :  { %v1139_v10 = vmul.f32 %v1107_v60, %v1968_v32  ;;  %v1109_v62 = vmul.f32 %v1077_v11, %v882_v9  ;;  %v1080_v32 = vunpack.c.l.bf16 %v1771_v34  ;;  %v1083_v34 = vunpack.c.h.bf16 %v1780_v37 }
 0x3fe   :  { %1170 = vst [vmem:[#allocation5 + $0x60] sm:$0xff] %v1138_v27  ;;  %v1140_v19 = vmul.f32 %v1108_v7, %v1017_v35  ;;  %v1089_v60 = vunpack.c.h.bf16 %v1801_v42  ;;  %v1091_v41 = vunpack.c.h.bf16 %v1812_v46  ;;  %v1092_v42 = vunpack.c.l.bf16 %v1817_v47 }
 0x3ff   :  { %1171 = vst [vmem:[#allocation5 + $0x68] sm:$0xff] %v1139_v10  ;;  %v1141_v15 = vmul.f32 %v1109_v62, %v1019_v1 }
 0x400   :  { %1172 = vst [vmem:[#allocation5 + $0x70] sm:$0xff] %v1140_v19 }
 0x401   :  { %1173 = vst [vmem:[#allocation5 + $0x78] sm:$0xff] %v1141_v15 }
 0x402   :  { %1279 = vmatmul.mubr.msk.bf16.gmra.mrb[48].mxu1 %vm787_vm5, %v761_v57 }
 0x403   :  { %914 = vmatprep.mubr.bf16.mxu1 %v1602_v44 }
 0x40a   :  { %1280 = vmatmul.mubr.msk.bf16.gmra.mrb[52].mxu1 %vm787_vm5, %v762_v25 }
 0x40b   :  { %1041 = vmatprep.mubr.bf16.mxu1 %v1602_v44 }
 0x412   :  { %1291 = vmatmul.mubr.msk.bf16.vlgmr.msra.gmra.mrb[56].mxu1 %vm787_vm5, %v761_v57 }
 0x413   :  { %1051 = vmatprep.mubr.bf16.mxu1 %v1602_v44 }
 0x41a   :  { %1292 = vmatmul.mubr.msk.bf16.gmra.mrb[60].mxu1 %vm787_vm5, %v762_v25 }
 0x4c5   :  { %v886_v0 = vpop.f32.mrb[40].mxu1  ;;  %v1023_v17 = vpop.f32.mrb[48].mxu0 }
 0x4c6   :  { %v1110_v31 = vmul.f32 %v1078_v28, %v886_v0  ;;  %v888_v35 = vpop.f32.mrb[41].mxu1  ;;  %v1025_v20 = vpop.f32.mrb[49].mxu0 }
 0x4c7   :  { %v1111_v36 = vmul.f32 %v1079_v14, %v888_v35  ;;  %v890_v39 = vpop.f32.mrb[42].mxu1  ;;  %v1027_v1 = vpop.f32.mrb[50].mxu0  ;;  %v1090_v14 = vunpack.c.l.bf16 %v1812_v46 }
 0x4c8   :  { %v1142_v40 = vmul.f32 %v1110_v31, %v1023_v17  ;;  %v1112_v44 = vmul.f32 %v1080_v32, %v890_v39  ;;  %v892_v43 = vpop.f32.mrb[43].mxu1  ;;  %v1029_v45 = vpop.f32.mrb[51].mxu0 }
 0x4c9   :  { %v1143_v48 = vmul.f32 %v1111_v36, %v1025_v20  ;;  %v1113_v49 = vmul.f32 %v1081_v30, %v892_v43  ;;  %v1093_v30 = vunpack.c.h.bf16 %v1817_v47 }
 0x4ca   :  { %1174 = vst [vmem:[#allocation5 + $0x80] sm:$0xff] %v1142_v40  ;;  %v1144_v33 = vmul.f32 %v1112_v44, %v1027_v1 }
 0x4cb   :  { %1175 = vst [vmem:[#allocation5 + $0x88] sm:$0xff] %v1143_v48  ;;  %v1145_v2 = vmul.f32 %v1113_v49, %v1029_v45 }
 0x4cc   :  { %1176 = vst [vmem:[#allocation5 + $0x90] sm:$0xff] %v1144_v33 }
 0x4cd   :  { %1177 = vst [vmem:[#allocation5 + $0x98] sm:$0xff] %v1145_v2  ;;  %v896_v5 = vpop.f32.mrb[44].mxu1  ;;  %v1033_v8 = vpop.f32.mrb[52].mxu0 }
 0x4ce   :  { %v1114_v54 = vmul.f32 %v1082_v51, %v896_v5  ;;  %v898_v13 = vpop.f32.mrb[45].mxu1  ;;  %v1035_v55 = vpop.f32.mrb[53].mxu0 }
 0x4cf   :  { %v1115_v23 = vmul.f32 %v1083_v34, %v898_v13  ;;  %v900_v16 = vpop.f32.mrb[46].mxu1  ;;  %v1037_v18 = vpop.f32.mrb[54].mxu0 }
 0x4d0   :  { %v1146_v21 = vmul.f32 %v1114_v54, %v1033_v8  ;;  %v1116_v22 = vmul.f32 %v1084_v52, %v900_v16  ;;  %v902_v26 = vpop.f32.mrb[47].mxu1  ;;  %v1039_v29 = vpop.f32.mrb[55].mxu0 }
 0x4d1   :  { %v1147_v58 = vmul.f32 %v1115_v23, %v1035_v55  ;;  %v1117_v37 = vmul.f32 %v1085_v53, %v902_v26 }
 0x4d2   :  { %1178 = vst [vmem:[#allocation5 + $0xa0] sm:$0xff] %v1146_v21  ;;  %v1148_v59 = vmul.f32 %v1116_v22, %v1037_v18 }
 0x4d3   :  { %1179 = vst [vmem:[#allocation5 + $0xa8] sm:$0xff] %v1147_v58  ;;  %v1149_v24 = vmul.f32 %v1117_v37, %v1039_v29 }
 0x4d4   :  { %1180 = vst [vmem:[#allocation5 + $0xb0] sm:$0xff] %v1148_v59 }
 0x4d5   :  { %1181 = vst [vmem:[#allocation5 + $0xb8] sm:$0xff] %v1149_v24  ;;  %v906_v61 = vpop.f32.mrb[48].mxu1 }
 0x4d6   :  { %v908_v38 = vpop.f32.mrb[49].mxu1  ;;  %v1118_v12 = vmul.f32 %v1086_v4, %v906_v61 }
 0x4d7   :  { %v910_v25 = vpop.f32.mrb[50].mxu1  ;;  %v1119_v27 = vmul.f32 %v1087_v56, %v908_v38 }
 0x4d8   :  { %v912_v63 = vpop.f32.mrb[51].mxu1  ;;  %v1120_v9 = vmul.f32 %v1088_v6, %v910_v25 }
 0x4d9   :  { %v1121_v19 = vmul.f32 %v1089_v60, %v912_v63 }
 0x4dd   :  { %v916_v3 = vpop.f32.mrb[52].mxu1 }
 0x4de   :  { %v918_v57 = vpop.f32.mrb[53].mxu1  ;;  %v1122_v31 = vmul.f32 %v1090_v14, %v916_v3 }
 0x4df   :  { %v920_v50 = vpop.f32.mrb[54].mxu1  ;;  %v1123_v35 = vmul.f32 %v1091_v41, %v918_v57 }
 0x4e0   :  { %v922_v11 = vpop.f32.mrb[55].mxu1  ;;  %v1124_v36 = vmul.f32 %v1092_v42, %v920_v50 }
 0x4e1   :  { %v1125_v40 = vmul.f32 %v1093_v30, %v922_v11 }
 0x4e5   :  { %v1043_v7 = vpop.f32.mrb[56].mxu1 }
 0x4e6   :  { %v1150_v10 = vmul.f32 %v1118_v12, %v1043_v7  ;;  %v1045_v62 = vpop.f32.mrb[57].mxu1 }
 0x4e7   :  { %v1151_v15 = vmul.f32 %v1119_v27, %v1045_v62  ;;  %v1047_v28 = vpop.f32.mrb[58].mxu1 }
 0x4e8   :  { %1182 = vst [vmem:[#allocation5 + $0xc0] sm:$0xff] %v1150_v10  ;;  %v1152_v32 = vmul.f32 %v1120_v9, %v1047_v28  ;;  %v1049_v0 = vpop.f32.mrb[59].mxu1 }
 0x4e9   :  { %1183 = vst [vmem:[#allocation5 + $0xc8] sm:$0xff] %v1151_v15  ;;  %v1153_v17 = vmul.f32 %v1121_v19, %v1049_v0 }
 0x4ea   :  { %1184 = vst [vmem:[#allocation5 + $0xd0] sm:$0xff] %v1152_v32 }
 0x4eb   :  { %1185 = vst [vmem:[#allocation5 + $0xd8] sm:$0xff] %v1153_v17 }
 0x4ed   :  { %v1053_v20 = vpop.f32.mrb[60].mxu1 }
 0x4ee   :  { %v1154_v39 = vmul.f32 %v1122_v31, %v1053_v20  ;;  %v1055_v1 = vpop.f32.mrb[61].mxu1 }
 0x4ef   :  { %v1155_v44 = vmul.f32 %v1123_v35, %v1055_v1  ;;  %v1057_v43 = vpop.f32.mrb[62].mxu1 }
 0x4f0   :  { %1186 = vst [vmem:[#allocation5 + $0xe0] sm:$0xff] %v1154_v39  ;;  %v1156_v46 = vmul.f32 %v1124_v36, %v1057_v43  ;;  %v1059_v45 = vpop.f32.mrb[63].mxu1 }
 0x4f1   :  { %1187 = vst [vmem:[#allocation5 + $0xe8] sm:$0xff] %v1155_v44  ;;  %v1157_v48 = vmul.f32 %v1125_v40, %v1059_v45 }
 0x4f2   :  { %1188 = vst [vmem:[#allocation5 + $0xf0] sm:$0xff] %v1156_v46 }
 0x4f3   :  { %1189 = vst [vmem:[#allocation5 + $0xf8] sm:$0xff] %v1157_v48 }
 0x4f4   :  { %1582 = shalt.err (!%p1579_p12)
}
 0x4f5   :  { %s1583_s24 = scalar_lea.hbm %s2037_s7, 4096 }
 0x4f6   :  { %p1584_p13 = scmp.ne.s32.totalorder %s2037_s7, %s1583_s24  ;;  %p1587_p0 = scmp.lt.u32.totalorder %s1583_s24, %s2037_s7 }
 0x4f8   :  { %p1589_p1 = pnand %p1587_p0, %p1584_p13 }
 0x4fa   :  { %1592 = shalt.err (!%p1589_p1)
}
 0x4fb   :  { %s1604_s29 = smov 256   ;;  %s1605_s1 = smov 16  }
 0x4fc   :  { %1201 = dma.vmem_to_hbm [thread:$0]  %s1196_s21, 4096, %s2037_s7, [#allocation4], %s1604_s29, %s1604_s29, %s1605_s1  }
 0x4fd   :  { %1595 = dma.done.wait [#allocation4], 4096  }
 0x4fe   :  { %1596 = vsyncadd [#allocation4], 4294963200 }
 0x4ff   :  { %1205 = vsyncpa [#allocation3], 1 }
 0x500   :  { %1206 = vsyncpa [#allocation4], 1 }

</bundles_post_ra>
